<compile_context>
chip_gen: v6e
topology: v6e:2x2x1
jax: 0.10.0
libtpu: 0.0.40
codegen_flags: <defaults>
</compile_context>

<pallas_src>
import functools

import jax
import jax.numpy as jnp
from jax import lax
from jax.experimental import pallas as pl
from jax.experimental.pallas import tpu as pltpu


def _round_up(a, b):
    return -(-a // b) * b


def _chip_profile():
    """(vmem_capacity_bytes, tensorcores_per_chip) with a conservative fallback."""
    vmem = None
    try:
        vmem = int(pltpu.get_tpu_info().vmem_capacity_bytes)
    except Exception:
        vmem = None
    if not vmem or vmem <= 0:
        vmem = 64 * 1024 * 1024  # assume the smallest per-TC VMEM (v7x)
    # v7x: 64 MiB VMEM / TC, 2 TCs per chip.  v5e / v6e: 128 MiB, 1 TC.
    num_tc = 2 if vmem <= 64 * 1024 * 1024 else 1
    return vmem, num_tc


def _row_mean_kernel(x_ref, o_ref, *, inv_dhw):
    """Whole reduction row per block: mean over the last axis, no scratch."""
    s = jnp.sum(x_ref[...].astype(jnp.float32), axis=-1, keepdims=True)
    o_ref[...] = (s * inv_dhw).astype(o_ref.dtype)


def _row_mean_accum_kernel(x_ref, o_ref, acc_ref, *, inv_dhw, rem):
    """K-tiled row mean: f32 partial sums in VMEM scratch.

    `rem` is the static number of valid lanes in the final K block (None when
    TK divides the reduction extent); masking runs only on that block.
    """
    k = pl.program_id(1)
    nk = pl.num_programs(1)
    is_last = k == nk - 1

    @pl.when(k == 0)
    def _init():
        acc_ref[...] = jnp.zeros_like(acc_ref)

    if rem is None:
        acc_ref[...] += jnp.sum(
            x_ref[...].astype(jnp.float32), axis=-1, keepdims=True)
    else:
        @pl.when(jnp.logical_not(is_last))
        def _full_block():
            acc_ref[...] += jnp.sum(
                x_ref[...].astype(jnp.float32), axis=-1, keepdims=True)

        @pl.when(is_last)
        def _ragged_block():
            x = x_ref[...].astype(jnp.float32)
            col = lax.broadcasted_iota(jnp.int32, x.shape, 1)
            x = jnp.where(col < rem, x, 0.0)
            acc_ref[...] += jnp.sum(x, axis=-1, keepdims=True)

    @pl.when(is_last)
    def _finalize():
        o_ref[...] = (acc_ref[...] * inv_dhw).astype(o_ref.dtype)


def adaptive_avg_pool3d_111(x, *, block_budget_bytes=None):
    """AdaptiveAvgPool3d([1, 1, 1]) for NCDHW input via a Pallas row reduction."""
    N, C, D, H, W = x.shape
    NC, DHW = N * C, D * H * W
    out_dtype = x.dtype

    if NC == 0 or DHW == 0:
        # Zero-size batch/channel: return the empty (N, C, 1, 1, 1) tensor.
        # TODO(synk): PyTorch raises on zero *spatial* extent (DHW == 0); we
        # return zeros there instead of erroring.
        return jnp.zeros((N, C, 1, 1, 1), dtype=out_dtype)

    flat = x.reshape(NC, DHW)
    itemsize = jnp.dtype(out_dtype).itemsize
    pack = max(8, 32 // itemsize)       # sublane packing: 8 f32 / 16 bf16 / 32 i8

    vmem_bytes, num_tc = _chip_profile()
    if block_budget_bytes is None:
        # f32-footprint budget per input block; >= ~4 MiB streamed is already at
        # HBM roofline, keep headroom on v7x's 64 MiB VMEM.
        block_budget_bytes = (8 * 1024 * 1024 if vmem_bytes <= 64 * 1024 * 1024
                              else 16 * 1024 * 1024)
    block_budget_bytes = min(block_budget_bytes, vmem_bytes // 6)

    # Budget counted in f32 elements so any sub-32-bit upcast intermediate is
    # bounded by the same number of bytes as the budget.
    elem_budget = max(pack * 128, block_budget_bytes // 4)
    inv_dhw = 1.0 / DHW

    if pack * DHW <= elem_budget:
        # Whole reduction row fits in one block: 1-D grid over row blocks.
        TK = DHW
        TM = (elem_budget // DHW) // pack * pack
        TM = max(pack, min(TM, _round_up(NC, pack)))
        if num_tc > 1 and NC > pack:
            # Multi-TensorCore chip (v7x): keep >= num_tc row blocks so the
            # "parallel" row axis can actually shard across cores.
            TM = min(TM, max(pack, _round_up(pl.cdiv(NC, num_tc), pack)))
        grid = (pl.cdiv(NC, TM),)
        kernel = functools.partial(_row_mean_kernel, inv_dhw=inv_dhw)
        in_specs = [pl.BlockSpec((TM, TK), lambda i: (i, 0))]
        out_specs = pl.BlockSpec((TM, 1), lambda i: (i, 0))
        scratch_shapes = []
        dim_sem = ("parallel",)
    else:
        # Reduction row too large for one block: lane-aligned K tiling with an
        # f32 scratch accumulator.  Reduction axis last, marked "arbitrary".
        TM = pack
        TK = max(128, (elem_budget // pack) // 128 * 128)
        n_k = pl.cdiv(DHW, TK)
        rem = None if DHW % TK == 0 else DHW - (n_k - 1) * TK
        grid = (pl.cdiv(NC, TM), n_k)
        kernel = functools.partial(_row_mean_accum_kernel,
                                   inv_dhw=inv_dhw, rem=rem)
        in_specs = [pl.BlockSpec((TM, TK), lambda i, k: (i, k))]
        out_specs = pl.BlockSpec((TM, 1), lambda i, k: (i, 0))
        scratch_shapes = [pltpu.VMEM((TM, 1), jnp.float32)]
        dim_sem = ("parallel", "arbitrary")

    # VMEM limit from actual block usage: double-buffered input + upcast
    # intermediate (sub-32-bit only) + one spare block for fused temporaries
    # + fixed slack; capped well below physical VMEM.
    in_block_bytes = TM * TK * itemsize
    f32_block_bytes = TM * TK * 4
    usage = 2 * in_block_bytes
    usage += f32_block_bytes if itemsize < 4 else 0
    usage += f32_block_bytes + 4 * 1024 * 1024
    vmem_limit = max(16 * 1024 * 1024, min(usage, vmem_bytes * 3 // 4))

    cost = pl.CostEstimate(
        flops=NC * DHW,
        transcendentals=0,
        bytes_accessed=NC * DHW * itemsize + NC * itemsize,
    )

    # NOTE: edge blocks read unspecified data for OOB rows; those rows' results
    # are dropped on the partial output store, and OOB lanes (K-tiled ragged
    # tail) are explicitly masked — keep that invariant if refactoring.
    out = pl.pallas_call(
        kernel,
        out_shape=jax.ShapeDtypeStruct((NC, 1), out_dtype),
        grid_spec=pltpu.PrefetchScalarGridSpec(
            num_scalar_prefetch=0,
            grid=grid,
            in_specs=in_specs,
            out_specs=out_specs,
            scratch_shapes=scratch_shapes,
        ),
        compiler_params=pltpu.CompilerParams(
            dimension_semantics=dim_sem,
            vmem_limit_bytes=int(vmem_limit),
        ),
        cost_estimate=cost,
    )(flat)

    return out.reshape(N, C, 1, 1, 1)


if __name__ == "__main__":
    key = jax.random.PRNGKey(0)

    # Case 1: default (single-K) path — whole row fits in one block.
    N, C, D, H, W = 2, 4, 4, 8, 8
    x = jax.random.normal(key, (N, C, D, H, W), dtype=jnp.float32)
    y = jax.block_until_ready(adaptive_avg_pool3d_111(x))
    ref = jnp.mean(x, axis=(2, 3, 4), keepdims=True)
    assert y.shape == (N, C, 1, 1, 1), y.shape
    assert jnp.allclose(y, ref, atol=1e-5, rtol=1e-5), "case1 mismatch vs reference"

    # Case 2: force the K-tiled accumulator path with ragged rows (NC=10) and a
    # ragged reduction tail (DHW=320, TK=256) via a tiny block budget.
    N2, C2, D2, H2, W2 = 2, 5, 4, 8, 10
    x2 = jax.random.normal(jax.random.fold_in(key, 1),
                           (N2, C2, D2, H2, W2), dtype=jnp.float32)
    y2 = jax.block_until_ready(
        adaptive_avg_pool3d_111(x2, block_budget_bytes=8 * 1024))
    ref2 = jnp.mean(x2, axis=(2, 3, 4), keepdims=True)
    assert y2.shape == (N2, C2, 1, 1, 1), y2.shape
    assert jnp.allclose(y2, ref2, atol=1e-5, rtol=1e-5), "case2 mismatch vs reference"

    # Case 3: bf16 input (f32 accumulation inside the kernel).
    x3 = jax.random.normal(jax.random.fold_in(key, 2),
                           (N, C, D, H, W), dtype=jnp.bfloat16)
    y3 = jax.block_until_ready(adaptive_avg_pool3d_111(x3))
    ref3 = jnp.mean(x3.astype(jnp.float32), axis=(2, 3, 4), keepdims=True)
    assert y3.shape == (N, C, 1, 1, 1), y3.shape
    assert jnp.allclose(y3.astype(jnp.float32), ref3, atol=2e-2), "case3 mismatch"

    # Case 4: zero-size batch (the "zero_size" case this module is named for).
    x0 = jnp.zeros((0, 4, 4, 8, 8), dtype=jnp.float32)
    y0 = jax.block_until_ready(adaptive_avg_pool3d_111(x0))
    assert y0.shape == (0, 4, 1, 1, 1), y0.shape

    print("KERNEL_OK")
</pallas_src>

<mosaic_0001>
module attributes {stable_mosaic.version = 11 : i64} {
  func.func @_row_mean_kernel(%arg0: i32, %arg1: memref<8x256xf32, #tpu.memory_space<vmem>>, %arg2: memref<8x1xf32, #tpu.memory_space<vmem>>) attributes {dimension_semantics = [#tpu.dimension_semantics<parallel>], iteration_bounds = array<i64: 1>, scalar_prefetch = 0 : i64, scratch_operands = 0 : i64, tpu.core_type = #tpu.core_type<tc>, window_params = [{transform_indices = @transform_0, window_bounds = array<i64: 8, 256>}, {transform_indices = @transform_1, window_bounds = array<i64: 8, 1>}]} {
    %c0 = arith.constant 0 : index
    %c0_0 = arith.constant 0 : index
    %0 = vector.load %arg1[%c0, %c0_0] : memref<8x256xf32, #tpu.memory_space<vmem>>, vector<8x256xf32>
    %cst = arith.constant dense<0.000000e+00> : vector<8xf32>
    %1 = vector.multi_reduction <add>, %0, %cst [1] : vector<8x256xf32> to vector<8xf32>
    %2 = vector.shape_cast %1 : vector<8xf32> to vector<8x1xf32>
    %cst_1 = arith.constant 3.906250e-03 : f32
    %3 = vector.broadcast %cst_1 : f32 to vector<8x1xf32>
    %4 = arith.mulf %2, %3 : vector<8x1xf32>
    %c0_2 = arith.constant 0 : index
    %c0_3 = arith.constant 0 : index
    %5 = vector.load %arg2[%c0_2, %c0_3] : memref<8x1xf32, #tpu.memory_space<vmem>>, vector<8x1xf32>
    tpu.vector_store %arg2[%c0_2, %c0_3], %4 {strides = array<i32>} : memref<8x1xf32, #tpu.memory_space<vmem>>, vector<8x1xf32>,
    return
  }
  func.func @transform_0(%arg0: i32) -> (i32, i32) {
    %c0_i32 = arith.constant 0 : i32
    %c0_i32_0 = arith.constant 0 : i32
    return %arg0, %c0_i32 : i32, i32
  }
  func.func @transform_1(%arg0: i32) -> (i32, i32) {
    %c0_i32 = arith.constant 0 : i32
    %c0_i32_0 = arith.constant 0 : i32
    return %arg0, %c0_i32 : i32, i32
  }
}

</mosaic_0001>

<bundles_post_ra>
// kernel: tpu_custom_call.1
= control target key start
LH: loop header
LB: loop body
LE: loop exit
PB: predicated region body
PF: predicated region fallthrough
CT: control target
= control target key end

     0   :  { %6 = vsyncpa [#allocation3], 0  ;;  %s56_s6 = smov [#allocation2]   ;;  %s73_s0 = inlined_call_operand.hbm [shape: f32[8,256], index: 0, kind: input, shape index: {}]   ;;  %s74_s1 = inlined_call_operand.vmem [shape: f32[8,1], index: 1, kind: output, shape index: {}]  }
   0x1   :  { %s13_s7 = sshll.u32 %s56_s6, 4  ;;  %s14_s7 = int_to_ptr.vmem [resolvable:$true] %s13_s7 }
   0x2   :  { %s42_s8 = scalar_lea.vmem %s14_s7, 256  ;;  %p47_p1 = scmp.lt.s32.totalorder %s14_s7, %s14_s7 }
   0x3   :  { %p43_p0 = scmp.ne.s32.totalorder %s14_s7, %s42_s8  ;;  %p48_p2 = scmp.lt.s32.totalorder %s42_s8, %s42_s8 }
   0x5   :  { %p49_p3 = por %p48_p2, %p47_p1 }
   0x7   :  { %p50_p4 = pnand %p49_p3, %p43_p0 }
   0x9   :  { %53 = shalt.err (!%p50_p4)
}
   0xa   :  { %16 = dma.hbm_to_vmem [thread:$0]  %s73_s0, 256, %s14_s7, [#allocation3]  }
   0xb   :  { %54 = dma.done.wait [#allocation3], 256  }
   0xc   :  { %55 = vsyncadd [#allocation3], 4294967040  ;;  %v20_v0 = vld [vmem:[#allocation2] sm:$0xff]  ;;  %v21_v1 = vld [vmem:[#allocation2 + $0x8] sm:$0xff]  ;;  %vm26_vm0 = vcmask 7168  }
   0xd   :  { %v22_v2 = vadd.f32 %v21_v1, %v20_v0 }
   0xf   :  { %23 = vadd.xlane.f32.xlu0 %v22_v2 }
  0x98   :  { %v24_v3 = vpop.xlane.xlu0 %23 }
  0x99   :  { %v25_v4 = vmul.f32 0.00390625, %v24_v3 }
  0x9b   :  { %27 = vst.msk [vmem:[%s74_s1] sm:$0xff] %vm26_vm0, %v25_v4 }
  0x9c   :  { %32 = vsyncpa [#allocation3], 1 }

</bundles_post_ra>
